<compile_context>
chip_gen: v7x
topology: tpu7x:2x2x1
jax: 0.10.0
libtpu: 0.0.40
codegen_flags: <defaults>
</compile_context>

<pallas_src>
import jax
import jax.numpy as jnp
from jax.experimental import pallas as pl
from jax.experimental.pallas import tpu as pltpu


def _round_up(x, m):
    return (x + m - 1) // m * m


def _vmem_budget_bytes():
    try:
        cap = pltpu.get_tpu_info().vmem_capacity_bytes
    except Exception:
        cap = 64 << 20  # conservative (v7x) default
    # Leave headroom for compiler-internal scratch; cap at 96 MiB (v5e/v6e).
    return min(int(cap) * 3 // 4, 96 << 20)


# --------------------------- kernel bodies ----------------------------------

def _gemm_bias_kernel(x_ref, w_ref, b_ref, o_ref):
    # Whole reduction (F) in one MXU pass: logits = x @ W + b.
    # x_ref: (TM, FP) bf16, w_ref: (FP, KP) bf16 (resident), b_ref: (1, KP) f32.
    o_ref[...] = (jnp.dot(x_ref[...], w_ref[...],
                          preferred_element_type=jnp.float32)
                  + b_ref[...]).astype(o_ref.dtype)


def _gemm_bias_acc_kernel(x_ref, w_ref, b_ref, o_ref, acc_ref):
    # Reduction over F tiles with an f32 VMEM accumulator (k is innermost).
    k = pl.program_id(1)

    @pl.when(k == 0)
    def _():
        acc_ref[...] = jnp.zeros_like(acc_ref)

    acc_ref[...] += jnp.dot(x_ref[...], w_ref[...],
                            preferred_element_type=jnp.float32)

    @pl.when(k == pl.num_programs(1) - 1)
    def _():
        o_ref[...] = (acc_ref[...] + b_ref[...]).astype(o_ref.dtype)


# --------------------------- wrapper / factory --------------------------------

def make_normalized_model(mean_c, std_c, w, b, chw):
    """Fold raw_to_clf into the classifier ONCE; return a jitted forward fn."""
    C, H, Wd = chw
    HW = H * Wd
    F, K = w.shape
    assert F == C * HW

    # ---- fold normalization into the classifier params (done once). --------
    inv_std_f = jnp.repeat((1.0 / std_c).astype(jnp.float32), HW)       # (F,)
    mean_f = jnp.repeat(mean_c.astype(jnp.float32), HW)                 # (F,)
    w_f32 = w.astype(jnp.float32)
    w_fold = inv_std_f[:, None] * w_f32                                 # (F, K)
    b_fold = b.astype(jnp.float32) - (mean_f * inv_std_f) @ w_f32       # (K,)

    KP = _round_up(K, 128)      # lane-dense output columns
    FP = _round_up(F, 128)      # 128-aligned reduction dim

    # bf16 streamed weight (precomputed, reused across calls); f32 bias.
    w_p = jnp.zeros((FP, KP), jnp.bfloat16).at[:F, :K].set(
        w_fold.astype(jnp.bfloat16))
    b_p = jnp.zeros((1, KP), jnp.float32).at[0, :K].set(b_fold)

    budget = _vmem_budget_bytes()

    @jax.jit
    def forward(x_nchw):
        B = x_nchw.shape[0]
        assert x_nchw.shape[1:] == (C, H, Wd)

        # ---- batch tiling: sublane-aligned, >=2 tiles when batch allows ----
        if B > 512:
            TM = 512 if budget > (80 << 20) else 256   # big tiles on v5e/v6e
        elif B >= 32:
            TM = _round_up((B + 1) // 2, 16)   # 2 tiles -> both v7x TCs busy
        else:
            TM = _round_up(max(B, 1), 16)
        BP = _round_up(B, TM)
        n_bt = BP // TM

        x_flat = x_nchw.reshape(B, F).astype(jnp.bfloat16)
        if BP == B and FP == F:
            x_p = x_flat                         # no materialized pad copy
        else:
            x_p = jnp.zeros((BP, FP), jnp.bfloat16).at[:B, :F].set(x_flat)

        # ---- fast path: whole W resident in VMEM, no reduction axis --------
        single_need = (2 * TM * FP * 2 + 2 * FP * KP * 2
                       + 2 * TM * KP * 4 + 2 * KP * 4)
        if single_need <= budget:
            flops = 2 * BP * FP * KP
            bytes_accessed = 2 * BP * FP + 2 * FP * KP + 4 * BP * KP + 4 * KP
            out = pl.pallas_call(
                _gemm_bias_kernel,
                out_shape=jax.ShapeDtypeStruct((BP, KP), jnp.float32),
                grid_spec=pltpu.PrefetchScalarGridSpec(
                    num_scalar_prefetch=0,
                    grid=(n_bt,),
                    in_specs=[
                        pl.BlockSpec((TM, FP), lambda i: (i, 0)),  # x tile
                        pl.BlockSpec((FP, KP), lambda i: (0, 0)),  # W resident
                        pl.BlockSpec((1, KP), lambda i: (0, 0)),   # bias
                    ],
                    out_specs=pl.BlockSpec((TM, KP), lambda i: (i, 0)),
                ),
                compiler_params=pltpu.CompilerParams(
                    dimension_semantics=("parallel",),
                    vmem_limit_bytes=min(max(2 * single_need, 32 << 20),
                                         budget),
                ),
                cost_estimate=pl.CostEstimate(
                    flops=flops, transcendentals=0,
                    bytes_accessed=bytes_accessed),
            )(x_p, w_p, b_p)
            return out[:B, :K]

        # ---- fallback: tile the reduction dim with an f32 accumulator -------
        TK = 128
        for cand in (8192, 4096, 2048, 1024, 512, 256):
            if FP % cand == 0:
                need = (2 * TM * cand * 2 + 2 * cand * KP * 2
                        + 3 * TM * KP * 4 + 2 * KP * 4)
                if need <= budget:
                    TK = cand
                    break
        n_kt = FP // TK
        need = (2 * TM * TK * 2 + 2 * TK * KP * 2
                + 3 * TM * KP * 4 + 2 * KP * 4)
        flops = 2 * BP * FP * KP
        # W is re-streamed once per batch tile with this grid ordering.
        bytes_accessed = (2 * BP * FP + 2 * n_bt * FP * KP
                          + 4 * BP * KP + 4 * KP)
        out = pl.pallas_call(
            _gemm_bias_acc_kernel,
            out_shape=jax.ShapeDtypeStruct((BP, KP), jnp.float32),
            grid_spec=pltpu.PrefetchScalarGridSpec(
                num_scalar_prefetch=0,
                grid=(n_bt, n_kt),
                in_specs=[
                    pl.BlockSpec((TM, TK), lambda i, k: (i, k)),   # x tile
                    pl.BlockSpec((TK, KP), lambda i, k: (k, 0)),   # W tile
                    pl.BlockSpec((1, KP), lambda i, k: (0, 0)),    # bias
                ],
                out_specs=pl.BlockSpec((TM, KP), lambda i, k: (i, 0)),
                scratch_shapes=[pltpu.VMEM((TM, KP), jnp.float32)],
            ),
            compiler_params=pltpu.CompilerParams(
                dimension_semantics=("parallel", "arbitrary"),
                vmem_limit_bytes=min(max(2 * need, 32 << 20), budget),
            ),
            cost_estimate=pl.CostEstimate(
                flops=flops, transcendentals=0,
                bytes_accessed=bytes_accessed),
        )(x_p, w_p, b_p)
        return out[:B, :K]

    return forward


if __name__ == "__main__":
    key = jax.random.PRNGKey(0)
    B, C, H, W = 2, 4, 16, 16
    F = C * H * W
    K = 10  # number of classes

    k_x, k_w, k_b = jax.random.split(key, 3)

    # Deterministic example input (NCHW, matching the PyTorch convention).
    x = jax.random.normal(k_x, (B, C, H, W), dtype=jnp.float32)

    # raw_to_clf parameters: per-channel mean / std.
    mean_c = jnp.array([0.485, 0.456, 0.406, 0.5], dtype=jnp.float32)
    std_c = jnp.array([0.229, 0.224, 0.225, 0.25], dtype=jnp.float32)

    # model parameters: linear classifier over flattened features.
    w = jax.random.normal(k_w, (F, K), dtype=jnp.float32) * 0.02
    b = jax.random.normal(k_b, (K,), dtype=jnp.float32) * 0.01

    # Build the fused NormalizedModel once (folds + pads + casts weights).
    forward = make_normalized_model(mean_c, std_c, w, b, (C, H, W))

    out = forward(x)
    jax.block_until_ready(out)

    # Reference check in plain JAX (same math as the PyTorch forward).
    xn_ref = (x - mean_c[None, :, None, None]) / std_c[None, :, None, None]
    ref = xn_ref.reshape(B, F) @ w + b
    assert out.shape == (B, K)
    # bf16 streamed operands with f32 accumulation -> loosened tolerance.
    assert jnp.allclose(out, ref, atol=1e-1, rtol=1e-2), float(
        jnp.max(jnp.abs(out - ref)))

    print("KERNEL_OK")
</pallas_src>

<mosaic_0001>
module attributes {stable_mosaic.version = 11 : i64} {
  func.func @_gemm_bias_kernel(%arg0: i32, %arg1: memref<16x1024xbf16, #tpu.memory_space<vmem>>, %arg2: memref<1024x128xbf16, #tpu.memory_space<vmem>>, %arg3: memref<1x128xf32, #tpu.memory_space<vmem>>, %arg4: memref<16x128xf32, #tpu.memory_space<vmem>>) attributes {dimension_semantics = [#tpu.dimension_semantics<parallel>], iteration_bounds = array<i64: 1>, scalar_prefetch = 0 : i64, scratch_operands = 0 : i64, tpu.core_type = #tpu.core_type<tc>, window_params = [{transform_indices = @transform_0, window_bounds = array<i64: 16, 1024>}, {pipeline_mode = #tpu.pipeline_mode<synchronous>, transform_indices = @transform_1, window_bounds = array<i64: 1024, 128>}, {pipeline_mode = #tpu.pipeline_mode<synchronous>, transform_indices = @transform_2, window_bounds = array<i64: 1, 128>}, {transform_indices = @transform_3, window_bounds = array<i64: 16, 128>}]} {
    %c0 = arith.constant 0 : index
    %c0_0 = arith.constant 0 : index
    %0 = vector.load %arg1[%c0, %c0_0] : memref<16x1024xbf16, #tpu.memory_space<vmem>>, vector<16x1024xbf16>
    %c0_1 = arith.constant 0 : index
    %c0_2 = arith.constant 0 : index
    %1 = vector.load %arg2[%c0_1, %c0_2] : memref<1024x128xbf16, #tpu.memory_space<vmem>>, vector<1024x128xbf16>
    %cst = arith.constant dense<0.000000e+00> : vector<16x128xf32>
    %2 = tpu.matmul %0, %1, %cst {dimension_numbers = #tpu.dot_dimension_numbers<[1], [0], [0], [1], [0, 0, 1, 1], [], []>} : vector<16x1024xbf16>, vector<1024x128xbf16>, vector<16x128xf32> -> vector<16x128xf32>
    %c0_3 = arith.constant 0 : index
    %c0_4 = arith.constant 0 : index
    %3 = vector.load %arg3[%c0_3, %c0_4] : memref<1x128xf32, #tpu.memory_space<vmem>>, vector<1x128xf32>
    %4 = vector.broadcast %3 : vector<1x128xf32> to vector<16x128xf32>
    %5 = arith.addf %2, %4 : vector<16x128xf32>
    %c0_5 = arith.constant 0 : index
    %c0_6 = arith.constant 0 : index
    %6 = vector.load %arg4[%c0_5, %c0_6] : memref<16x128xf32, #tpu.memory_space<vmem>>, vector<16x128xf32>
    tpu.vector_store %arg4[%c0_5, %c0_6], %5 {strides = array<i32>} : memref<16x128xf32, #tpu.memory_space<vmem>>, vector<16x128xf32>,
    return
  }
  func.func @transform_0(%arg0: i32) -> (i32, i32) {
    %c0_i32 = arith.constant 0 : i32
    %c0_i32_0 = arith.constant 0 : i32
    return %arg0, %c0_i32 : i32, i32
  }
  func.func @transform_1(%arg0: i32) -> (i32, i32) {
    %c0_i32 = arith.constant 0 : i32
    %c0_i32_0 = arith.constant 0 : i32
    %c0_i32_1 = arith.constant 0 : i32
    return %c0_i32, %c0_i32_0 : i32, i32
  }
  func.func @transform_2(%arg0: i32) -> (i32, i32) {
    %c0_i32 = arith.constant 0 : i32
    %c0_i32_0 = arith.constant 0 : i32
    %c0_i32_1 = arith.constant 0 : i32
    return %c0_i32, %c0_i32_0 : i32, i32
  }
  func.func @transform_3(%arg0: i32) -> (i32, i32) {
    %c0_i32 = arith.constant 0 : i32
    %c0_i32_0 = arith.constant 0 : i32
    return %arg0, %c0_i32 : i32, i32
  }
}

</mosaic_0001>

<bundles_post_ra>
// kernel: forward.1
= control target key start
LH: loop header
LB: loop body
LE: loop exit
PB: predicated region body
PF: predicated region fallthrough
CT: control target
= control target key end

     0   :  { %8 = vsyncpa [#allocation3], 0  ;;  %s1019_s12 = smov [#allocation2]   ;;  %s1087_s0 = inlined_call_operand.vmem [shape: bf16[16,1024], index: 0, kind: input, shape index: {}]   ;;  %s1088_s1 = inlined_call_operand.hbm [shape: bf16[1024,128], index: 1, kind: input, shape index: {}]   ;;  %s1089_s2 = inlined_call_operand.vmem [shape: f32[1,128], index: 2, kind: input, shape index: {}]   ;;  %s1090_s3 = inlined_call_operand.vmem [shape: f32[16,128], index: 3, kind: output, shape index: {}]  }
   0x1   :  { %s16_s13 = sshll.u32 %s1019_s12, 4  ;;  %s995_s16 = scalar_lea.hbm %s1088_s1, 8192  ;;  %s17_s13 = int_to_ptr.vmem [resolvable:$true] %s16_s13 }
   0x2   :  { %p996_p0 = scmp.ne.s32.totalorder %s1088_s1, %s995_s16  ;;  %p999_p1 = scmp.lt.u32.totalorder %s995_s16, %s1088_s1 }
   0x4   :  { %p1001_p2 = pnand %p999_p1, %p996_p0 }
   0x6   :  { %1004 = shalt.err (!%p1001_p2)
}
   0x7   :  { %s1005_s21 = scalar_lea.vmem %s17_s13, 8192  ;;  %p1010_p4 = scmp.lt.s32.totalorder %s17_s13, %s17_s13 }
   0x8   :  { %p1006_p3 = scmp.ne.s32.totalorder %s17_s13, %s1005_s21  ;;  %p1011_p5 = scmp.lt.s32.totalorder %s1005_s21, %s1005_s21 }
   0xa   :  { %p1012_p6 = por %p1011_p5, %p1010_p4 }
   0xc   :  { %p1013_p7 = pnand %p1012_p6, %p1006_p3 }
   0xe   :  { %1016 = shalt.err (!%p1013_p7)
}
   0xf   :  { %s1020_s22 = smov 64   ;;  %s1021_s23 = smov 4  }
  0x10   :  { %22 = dma.hbm_to_vmem [thread:$0]  %s1088_s1, 8192, %s17_s13, [#allocation3], %s1020_s22, %s1020_s22, %s1021_s23  }
  0x11   :  { %1017 = dma.done.wait [#allocation3], 8192  }
  0x12   :  { %1018 = vsyncadd [#allocation3], 4294959104  ;;  %v931_v0 = vld [vmem:[#allocation2 + $0x40] sm:$0xff]   ;;  %v935_v4 = vld [vmem:[#allocation2 + $0x48] sm:$0xff]  }
  0x13   :  { %v932_v1 = vld [vmem:[#allocation2 + $0xc0] sm:$0xff]   ;;  %840 = vmatprep.subr.bf16.mxu0 %v931_v0  ;;  %v936_v5 = vld [vmem:[#allocation2 + $0xc8] sm:$0xff]   ;;  %v939_v8 = vld [vmem:[#allocation2 + $0x50] sm:$0xff]  }
  0x14   :  { %v933_v2 = vld [vmem:[#allocation2] sm:$0xff]   ;;  %862 = vmatprep.subr.bf16.mxu1 %v932_v1  ;;  %v937_v6 = vld [vmem:[#allocation2 + $0x8] sm:$0xff]   ;;  %v940_v9 = vld [vmem:[#allocation2 + $0xd0] sm:$0xff]  }
  0x15   :  { %v934_v3 = vld [vmem:[#allocation2 + $0x80] sm:$0xff]   ;;  %841 = vmatpush3.bf16.msra.mxu0 %v933_v2  ;;  %v938_v7 = vld [vmem:[#allocation2 + $0x88] sm:$0xff]   ;;  %v941_v10 = vld [vmem:[#allocation2 + $0x10] sm:$0xff]  }
  0x16   :  { %863 = vmatpush3.bf16.msra.mxu1 %v934_v3  ;;  %842 = vmatprep.subr.bf16.mxu0 %v935_v4  ;;  %v942_v11 = vld [vmem:[#allocation2 + $0x90] sm:$0xff]   ;;  %v943_v12 = vld [vmem:[#allocation2 + $0x58] sm:$0xff]   ;;  %v947_v16 = vld [vmem:[#allocation2 + $0x60] sm:$0xff]  }
  0x17   :  { %864 = vmatprep.subr.bf16.mxu1 %v936_v5  ;;  %v944_v13 = vld [vmem:[#allocation2 + $0xd8] sm:$0xff]   ;;  %v948_v17 = vld [vmem:[#allocation2 + $0xe0] sm:$0xff]   ;;  %v951_v20 = vld [vmem:[#allocation2 + $0x68] sm:$0xff]  }
  0x18   :  { %v945_v14 = vld [vmem:[#allocation2 + $0x18] sm:$0xff]   ;;  %v949_v18 = vld [vmem:[#allocation2 + $0x20] sm:$0xff]   ;;  %v952_v21 = vld [vmem:[#allocation2 + $0xe8] sm:$0xff]  }
  0x19   :  { %843 = vmatpush3.bf16.msra.mxu0 %v937_v6  ;;  %v946_v15 = vld [vmem:[#allocation2 + $0x98] sm:$0xff]   ;;  %v950_v19 = vld [vmem:[#allocation2 + $0xa0] sm:$0xff]   ;;  %v953_v22 = vld [vmem:[#allocation2 + $0x28] sm:$0xff]  }
  0x1a   :  { %865 = vmatpush3.bf16.msra.mxu1 %v938_v7  ;;  %844 = vmatprep.subr.bf16.mxu0 %v939_v8  ;;  %v954_v23 = vld [vmem:[#allocation2 + $0xa8] sm:$0xff]   ;;  %v955_v24 = vld [vmem:[#allocation2 + $0x70] sm:$0xff]   ;;  %v959_v28 = vld [vmem:[#allocation2 + $0x78] sm:$0xff]  }
  0x1b   :  { %866 = vmatprep.subr.bf16.mxu1 %v940_v9  ;;  %v956_v25 = vld [vmem:[#allocation2 + $0xf0] sm:$0xff]   ;;  %v960_v29 = vld [vmem:[#allocation2 + $0xf8] sm:$0xff]   ;;  %v29_v32 = vld [vmem:[%s1087_s0] sm:$0xff] }
  0x1c   :  { %v957_v26 = vld [vmem:[#allocation2 + $0x30] sm:$0xff]   ;;  %v961_v30 = vld [vmem:[#allocation2 + $0x38] sm:$0xff]   ;;  %v33_v33 = vld [vmem:[%s1087_s0 + $0x20] sm:$0xff] }
  0x1d   :  { %845 = vmatpush3.bf16.msra.mxu0 %v941_v10  ;;  %v958_v27 = vld [vmem:[#allocation2 + $0xb0] sm:$0xff]   ;;  %v962_v31 = vld [vmem:[#allocation2 + $0xb8] sm:$0xff]   ;;  %v30_v34 = vld [vmem:[%s1087_s0 + $0x8] sm:$0xff]  ;;  %v768_v35 = vcombine.low %v29_v32, %v33_v33  ;;  %v769_v36 = vcombine.high %v29_v32, %v33_v33 }
  0x1e   :  { %867 = vmatpush3.bf16.msra.mxu1 %v942_v11  ;;  %846 = vmatprep.subr.bf16.mxu0 %v943_v12  ;;  %v34_v37 = vld [vmem:[%s1087_s0 + $0x28] sm:$0xff]  ;;  %v963_v40 = vld [vmem:[#allocation2 + $0x140] sm:$0xff]   ;;  %v971_v48 = vld [vmem:[#allocation2 + $0x150] sm:$0xff]  }
  0x1f   :  { %868 = vmatprep.subr.bf16.mxu1 %v944_v13  ;;  %v770_v38 = vcombine.low %v30_v34, %v34_v37  ;;  %v771_v39 = vcombine.high %v30_v34, %v34_v37  ;;  %628 = vmatprep.mubr.bf16.mxu0 %v769_v36  ;;  %v964_v41 = vld [vmem:[#allocation2 + $0x1c0] sm:$0xff]   ;;  %v967_v44 = vld [vmem:[#allocation2 + $0x148] sm:$0xff]   ;;  %v972_v49 = vld [vmem:[#allocation2 + $0x1d0] sm:$0xff]  }
  0x20   :  { %v965_v42 = vld [vmem:[#allocation2 + $0x100] sm:$0xff]   ;;  %v968_v45 = vld [vmem:[#allocation2 + $0x1c8] sm:$0xff]   ;;  %v973_v50 = vld [vmem:[#allocation2 + $0x110] sm:$0xff]  }
  0x21   :  { %847 = vmatpush3.bf16.msra.mxu0 %v945_v14  ;;  %669 = vmatprep.mubr.bf16.mxu1 %v771_v39  ;;  %v966_v43 = vld [vmem:[#allocation2 + $0x180] sm:$0xff]   ;;  %v969_v46 = vld [vmem:[#allocation2 + $0x108] sm:$0xff]   ;;  %v974_v51 = vld [vmem:[#allocation2 + $0x190] sm:$0xff]  }
  0x22   :  { %869 = vmatpush3.bf16.msra.mxu1 %v946_v15  ;;  %848 = vmatprep.subr.bf16.mxu0 %v947_v16  ;;  %v970_v47 = vld [vmem:[#allocation2 + $0x188] sm:$0xff]   ;;  %v975_v52 = vld [vmem:[#allocation2 + $0x158] sm:$0xff]   ;;  %v979_v56 = vld [vmem:[#allocation2 + $0x160] sm:$0xff]  }
  0x23   :  { %870 = vmatprep.subr.bf16.mxu1 %v948_v17  ;;  %v976_v53 = vld [vmem:[#allocation2 + $0x1d8] sm:$0xff]   ;;  %v980_v57 = vld [vmem:[#allocation2 + $0x1e0] sm:$0xff]   ;;  %v983_v60 = vld [vmem:[#allocation2 + $0x168] sm:$0xff]  }
  0x24   :  { %v977_v54 = vld [vmem:[#allocation2 + $0x118] sm:$0xff]   ;;  %v981_v58 = vld [vmem:[#allocation2 + $0x120] sm:$0xff]   ;;  %v984_v61 = vld [vmem:[#allocation2 + $0x1e8] sm:$0xff]  }
  0x25   :  { %849 = vmatpush3.bf16.msra.mxu0 %v949_v18  ;;  %v978_v55 = vld [vmem:[#allocation2 + $0x198] sm:$0xff]   ;;  %v982_v59 = vld [vmem:[#allocation2 + $0x1a0] sm:$0xff]   ;;  %v985_v62 = vld [vmem:[#allocation2 + $0x128] sm:$0xff]  }
  0x26   :  { %871 = vmatpush3.bf16.msra.mxu1 %v950_v19  ;;  %850 = vmatprep.subr.bf16.mxu0 %v951_v20  ;;  %v986_v63 = vld [vmem:[#allocation2 + $0x1a8] sm:$0xff]   ;;  %v987_v0 = vld [vmem:[#allocation2 + $0x170] sm:$0xff]   ;;  %v991_v4 = vld [vmem:[#allocation2 + $0x178] sm:$0xff]  }
  0x27   :  { %872 = vmatprep.subr.bf16.mxu1 %v952_v21  ;;  %v988_v1 = vld [vmem:[#allocation2 + $0x1f0] sm:$0xff]   ;;  %v992_v5 = vld [vmem:[#allocation2 + $0x1f8] sm:$0xff]   ;;  %v767_v18 = vld [vmem:[%s1089_s2] ss:$0 sm:$0xff] }
  0x28   :  { %v989_v2 = vld [vmem:[#allocation2 + $0x130] sm:$0xff]   ;;  %v993_v6 = vld [vmem:[#allocation2 + $0x138] sm:$0xff]  }
  0x29   :  { %851 = vmatpush3.bf16.msra.mxu0 %v953_v22  ;;  %v990_v3 = vld [vmem:[#allocation2 + $0x1b0] sm:$0xff]   ;;  %v994_v7 = vld [vmem:[#allocation2 + $0x1b8] sm:$0xff]  }
  0x2a   :  { %873 = vmatpush3.bf16.msra.mxu1 %v954_v23  ;;  %852 = vmatprep.subr.bf16.mxu0 %v955_v24  ;;  %v31_v8 = vld [vmem:[%s1087_s0 + $0x10] sm:$0xff]  ;;  %v32_v12 = vld [vmem:[%s1087_s0 + $0x18] sm:$0xff] }
  0x2b   :  { %874 = vmatprep.subr.bf16.mxu1 %v956_v25  ;;  %v35_v9 = vld [vmem:[%s1087_s0 + $0x30] sm:$0xff]  ;;  %v36_v13 = vld [vmem:[%s1087_s0 + $0x38] sm:$0xff] }
  0x2c   :  { %v772_v10 = vcombine.low %v31_v8, %v35_v9  ;;  %v773_v11 = vcombine.high %v31_v8, %v35_v9  ;;  %v774_v14 = vcombine.low %v32_v12, %v36_v13  ;;  %v775_v15 = vcombine.high %v32_v12, %v36_v13 }
  0x2d   :  { %853 = vmatpush3.bf16.msra.mxu0 %v957_v26 }
  0x2e   :  { %875 = vmatpush3.bf16.msra.mxu1 %v958_v27  ;;  %854 = vmatprep.subr.bf16.mxu0 %v959_v28 }
  0x2f   :  { %876 = vmatprep.subr.bf16.mxu1 %v960_v29 }
  0x31   :  { %855 = vmatpush3.bf16.msra.mxu0 %v961_v30 }
  0x32   :  { %877 = vmatpush3.bf16.msra.mxu1 %v962_v31  ;;  %884 = vmatprep.subr.bf16.mxu0 %v963_v40 }
  0x33   :  { %906 = vmatprep.subr.bf16.mxu1 %v964_v41 }
  0x34   :  { %629 = vmatmul.mubr.bf16.vlgmr.msra.gmra.mrb[0].mxu0 %v768_v35 }
  0x35   :  { %670 = vmatmul.mubr.bf16.vlgmr.msra.gmra.mrb[0].mxu1 %v770_v38  ;;  %885 = vmatpush3.bf16.msra.mxu0 %v965_v42 }
  0x36   :  { %907 = vmatpush3.bf16.msra.mxu1 %v966_v43  ;;  %886 = vmatprep.subr.bf16.mxu0 %v967_v44 }
  0x37   :  { %908 = vmatprep.subr.bf16.mxu1 %v968_v45  ;;  %710 = vmatprep.mubr.bf16.mxu0 %v773_v11 }
  0x38   :  { %751 = vmatprep.mubr.bf16.mxu1 %v775_v15 }
  0x39   :  { %887 = vmatpush3.bf16.msra.mxu0 %v969_v46 }
  0x3a   :  { %909 = vmatpush3.bf16.msra.mxu1 %v970_v47  ;;  %888 = vmatprep.subr.bf16.mxu0 %v971_v48 }
  0x3b   :  { %910 = vmatprep.subr.bf16.mxu1 %v972_v49 }
  0x3d   :  { %889 = vmatpush3.bf16.msra.mxu0 %v973_v50 }
  0x3e   :  { %911 = vmatpush3.bf16.msra.mxu1 %v974_v51  ;;  %890 = vmatprep.subr.bf16.mxu0 %v975_v52 }
  0x3f   :  { %912 = vmatprep.subr.bf16.mxu1 %v976_v53 }
  0x41   :  { %891 = vmatpush3.bf16.msra.mxu0 %v977_v54 }
  0x42   :  { %913 = vmatpush3.bf16.msra.mxu1 %v978_v55  ;;  %892 = vmatprep.subr.bf16.mxu0 %v979_v56 }
  0x43   :  { %914 = vmatprep.subr.bf16.mxu1 %v980_v57 }
  0x45   :  { %893 = vmatpush3.bf16.msra.mxu0 %v981_v58 }
  0x46   :  { %915 = vmatpush3.bf16.msra.mxu1 %v982_v59  ;;  %894 = vmatprep.subr.bf16.mxu0 %v983_v60 }
  0x47   :  { %916 = vmatprep.subr.bf16.mxu1 %v984_v61 }
  0x49   :  { %895 = vmatpush3.bf16.msra.mxu0 %v985_v62 }
  0x4a   :  { %917 = vmatpush3.bf16.msra.mxu1 %v986_v63  ;;  %896 = vmatprep.subr.bf16.mxu0 %v987_v0 }
  0x4b   :  { %918 = vmatprep.subr.bf16.mxu1 %v988_v1 }
  0x4d   :  { %897 = vmatpush3.bf16.msra.mxu0 %v989_v2 }
  0x4e   :  { %919 = vmatpush3.bf16.msra.mxu1 %v990_v3  ;;  %898 = vmatprep.subr.bf16.mxu0 %v991_v4 }
  0x4f   :  { %920 = vmatprep.subr.bf16.mxu1 %v992_v5 }
  0x51   :  { %899 = vmatpush3.bf16.msra.mxu0 %v993_v6 }
  0x52   :  { %921 = vmatpush3.bf16.msra.mxu1 %v994_v7 }
  0x54   :  { %711 = vmatmul.mubr.bf16.vlgmr.msra.gmra.mrb[4].mxu0 %v772_v10 }
  0x55   :  { %752 = vmatmul.mubr.bf16.vlgmr.msra.gmra.mrb[4].mxu1 %v774_v14 }
 0x107   :  { %v856_v16 = vpop.f32.mrb[0].mxu0 }
 0x108   :  { %v878_v17 = vpop.f32.mrb[0].mxu1  ;;  %v857_v19 = vpop.f32.mrb[1].mxu0 }
 0x109   :  { %v858_v20 = vadd.f32 %v857_v19, %v856_v16  ;;  %v879_v21 = vpop.f32.mrb[1].mxu1  ;;  %v859_v22 = vpop.f32.mrb[2].mxu0 }
 0x10a   :  { %v880_v23 = vadd.f32 %v879_v21, %v878_v17  ;;  %v881_v24 = vpop.f32.mrb[2].mxu1  ;;  %v860_v25 = vpop.f32.mrb[3].mxu0 }
 0x10b   :  { %v631_v26 = vadd.f32 %v858_v20, %v767_v18  ;;  %v861_v27 = vadd.f32 %v860_v25, %v859_v22  ;;  %v882_v28 = vpop.f32.mrb[3].mxu1 }
 0x10c   :  { %v883_v29 = vadd.f32 %v882_v28, %v881_v24 }
 0x10d   :  { %v672_v30 = vadd.f32 %v880_v23, %v631_v26  ;;  %v634_v31 = vadd.f32 %v861_v27, %v767_v18 }
 0x10f   :  { %v675_v32 = vadd.f32 %v883_v29, %v634_v31 }
 0x127   :  { %v900_v33 = vpop.f32.mrb[4].mxu0 }
 0x128   :  { %v922_v34 = vpop.f32.mrb[4].mxu1  ;;  %v901_v35 = vpop.f32.mrb[5].mxu0 }
 0x129   :  { %v902_v36 = vadd.f32 %v901_v35, %v900_v33  ;;  %v923_v37 = vpop.f32.mrb[5].mxu1  ;;  %v903_v38 = vpop.f32.mrb[6].mxu0 }
 0x12a   :  { %v924_v39 = vadd.f32 %v923_v37, %v922_v34  ;;  %v925_v40 = vpop.f32.mrb[6].mxu1  ;;  %v904_v41 = vpop.f32.mrb[7].mxu0 }
 0x12b   :  { %v713_v42 = vadd.f32 %v902_v36, %v672_v30  ;;  %v905_v43 = vadd.f32 %v904_v41, %v903_v38  ;;  %v926_v44 = vpop.f32.mrb[7].mxu1 }
 0x12c   :  { %v927_v45 = vadd.f32 %v926_v44, %v925_v40 }
 0x12d   :  { %v754_v46 = vadd.f32 %v924_v39, %v713_v42  ;;  %v716_v47 = vadd.f32 %v905_v43, %v675_v32 }
 0x12f   :  { %760 = vst [vmem:[%s1090_s3] sm:$0xff] %v754_v46  ;;  %v757_v48 = vadd.f32 %v927_v45, %v716_v47 }
 0x131   :  { %761 = vst [vmem:[%s1090_s3 + $0x8] sm:$0xff] %v757_v48 }
 0x132   :  { %766 = vsyncpa [#allocation3], 1 }

</bundles_post_ra>
